<compile_context>
chip_gen: v6e
topology: v6e:2x2x1
jax: 0.10.0
libtpu: 0.0.40
codegen_flags: <defaults>
</compile_context>

<pallas_src>
import functools

import jax
import jax.numpy as jnp
from jax.experimental import pallas as pl
from jax.experimental.pallas import tpu as pltpu


# ----------------------------------------------------------------------------
# helpers: chip-aware tiling
# ----------------------------------------------------------------------------
def _vmem_capacity_bytes():
    """Physical VMEM per TensorCore; conservative fallback if query fails."""
    try:
        cap = int(pltpu.get_tpu_info().vmem_capacity_bytes)
        if cap > 0:
            return cap
    except Exception:
        pass
    return 64 * 1024 * 1024  # v7x per-TC VMEM (smallest of v5e/v6e/v7x)


def _row_tile(num_rows, lane, itemsize, budget_bytes):
    """Largest sublane tile whose single pipelined buffer fits budget_bytes."""
    t = budget_bytes // max(1, lane * itemsize)
    t = max(8, (t // 8) * 8)          # second-minor block dim must be 8-aligned
    if t >= num_rows:
        return num_rows               # full-extent block is always legal
    return t


def _vmem_limit_bytes(cap):
    return int(min(cap * 3 // 4, 96 * 1024 * 1024))


# ----------------------------------------------------------------------------
# SmoothL1Loss (get_max_preds argmax decode + smooth L1, mean reduction)
# ----------------------------------------------------------------------------
def _smooth_l1_kernel(hm_ref, tgt_ref, w_ref, out_ref, acc_ref, *,
                      width, num_rows, block_rows, use_target_weight, beta,
                      denom):
    j = pl.program_id(0)

    @pl.when(j == 0)
    def _init():
        acc_ref[...] = jnp.zeros_like(acc_ref)

    hm = hm_ref[...]                                   # [T, HW], native dtype
    t_rows, hw = hm.shape

    # --- get_max_preds: first argmax over the flattened heatmap -------------
    maxvals = jnp.max(hm, axis=-1, keepdims=True)      # [T, 1]
    lane_ids = jax.lax.broadcasted_iota(jnp.int32, (t_rows, hw), 1)
    cand = jnp.where(hm == maxvals, lane_ids, hw)      # non-max -> sentinel hw
    idx = jnp.min(cand, axis=-1, keepdims=True)        # [T, 1] first occurrence

    if width & (width - 1) == 0:                       # power-of-two fast path
        x = (idx & (width - 1)).astype(jnp.float32)
        y = (idx >> (width.bit_length() - 1)).astype(jnp.float32)
    else:
        # exact while H*W < 2**24
        idx_f = idx.astype(jnp.float32)
        y = jnp.floor(idx_f / float(width))
        x = idx_f - y * float(width)

    pred_mask = (maxvals > 0).astype(jnp.float32)
    x = x * pred_mask
    y = y * pred_mask

    # --- smooth L1 against target coords (x / y kept as separate columns) ---
    tx = tgt_ref[:, 0:1].astype(jnp.float32)
    ty = tgt_ref[:, 1:2].astype(jnp.float32)
    if use_target_weight:
        wx = w_ref[:, 0:1].astype(jnp.float32)
        wy = w_ref[:, 1:2].astype(jnp.float32)
        x, tx = x * wx, tx * wx
        y, ty = y * wy, ty * wy

    def _sl1(a, b):
        d = a - b
        ad = jnp.abs(d)
        return jnp.where(ad < beta, 0.5 * d * d / beta, ad - 0.5 * beta)

    contrib = _sl1(x, tx) + _sl1(y, ty)                # [T, 1]

    # mask rows past the true N*K extent (remainder tile)
    row_ids = j * block_rows + jax.lax.broadcasted_iota(jnp.int32, (t_rows, 1), 0)
    contrib = jnp.where(row_ids < num_rows, contrib, 0.0)

    acc_ref[...] += jnp.sum(contrib, keepdims=True)

    @pl.when(j == pl.num_programs(0) - 1)
    def _finalize():
        out_ref[...] = acc_ref[...] * (1.0 / denom)


def smooth_l1_loss(output_heatmaps, target, target_weight,
                   use_target_weight=True, beta=1.0):
    """output_heatmaps: [N,K,H,W]; target: [N,K,2]; target_weight: [N,K,1|2]."""
    N, K, H, W = output_heatmaps.shape
    D = target.shape[-1]
    assert D == 2, "get_max_preds decodes 2-D (x, y) keypoints"
    NK, HW = N * K, H * W

    hm = output_heatmaps.reshape(NK, HW)               # streamed in native dtype
    tgt = target.reshape(NK, D).astype(jnp.float32)
    w = jnp.broadcast_to(target_weight, target.shape).reshape(NK, D)
    w = w.astype(jnp.float32)

    cap = _vmem_capacity_bytes()
    t_rows = _row_tile(NK, HW, hm.dtype.itemsize, cap // 8)
    num_tiles = pl.cdiv(NK, t_rows)

    kernel = functools.partial(
        _smooth_l1_kernel, width=W, num_rows=NK, block_rows=t_rows,
        use_target_weight=bool(use_target_weight), beta=float(beta),
        denom=float(NK * D))

    cost = pl.CostEstimate(
        flops=int(6 * NK * HW),
        transcendentals=0,
        bytes_accessed=int(hm.size * hm.dtype.itemsize + 4 * tgt.size
                           + 4 * w.size + 4))

    out = pl.pallas_call(
        kernel,
        out_shape=jax.ShapeDtypeStruct((1, 1), jnp.float32),
        grid_spec=pltpu.PrefetchScalarGridSpec(
            num_scalar_prefetch=0,
            grid=(num_tiles,),
            in_specs=[
                pl.BlockSpec((t_rows, HW), lambda j: (j, 0)),
                pl.BlockSpec((t_rows, D), lambda j: (j, 0)),
                pl.BlockSpec((t_rows, D), lambda j: (j, 0)),
            ],
            out_specs=pl.BlockSpec((1, 1), lambda j: (0, 0)),
            scratch_shapes=[pltpu.VMEM((1, 1), jnp.float32)],
        ),
        compiler_params=pltpu.CompilerParams(
            dimension_semantics=("arbitrary",),
            vmem_limit_bytes=_vmem_limit_bytes(cap)),
        cost_estimate=cost,
    )(hm, tgt, w)
    return out[0, 0]


# ----------------------------------------------------------------------------
# KLDiscretLoss (log_softmax / softmax along bins, KLDivLoss batchmean)
# ----------------------------------------------------------------------------
def _kl_kernel(x_ref, t_ref, w_ref, out_ref, acc_ref, *,
               num_rows, block_rows, use_target_weight, denom):
    j = pl.program_id(0)

    @pl.when(j == 0)
    def _init():
        acc_ref[...] = jnp.zeros_like(acc_ref)

    x = x_ref[...].astype(jnp.float32)                 # [T, L] logits
    t = t_ref[...].astype(jnp.float32)                 # [T, L] target logits
    t_rows = x.shape[0]

    # log_softmax(output) along the bin axis (lanes)
    xs = x - jnp.max(x, axis=-1, keepdims=True)
    logp = xs - jnp.log(jnp.sum(jnp.exp(xs), axis=-1, keepdims=True))
    # softmax(target) along the bin axis
    te = jnp.exp(t - jnp.max(t, axis=-1, keepdims=True))
    q = te / jnp.sum(te, axis=-1, keepdims=True)

    if use_target_weight:
        w = w_ref[...].astype(jnp.float32)             # [T, 1] per-(n,k) weight
        logp = logp * w
        q = q * w

    # KLDivLoss pointwise: target * (log(target) - input); zero where target<=0
    safe_q = jnp.where(q > 0, q, 1.0)
    pw = jnp.where(q > 0, q * (jnp.log(safe_q) - logp), 0.0)
    row_sum = jnp.sum(pw, axis=-1, keepdims=True)      # [T, 1]

    row_ids = j * block_rows + jax.lax.broadcasted_iota(jnp.int32, (t_rows, 1), 0)
    row_sum = jnp.where(row_ids < num_rows, row_sum, 0.0)

    acc_ref[...] += jnp.sum(row_sum, keepdims=True)

    @pl.when(j == pl.num_programs(0) - 1)
    def _finalize():
        out_ref[...] = acc_ref[...] * (1.0 / denom)


def kl_discret_loss(output, target, target_weight, use_target_weight=True):
    """output, target: [N,K,L]; target_weight: [N,K,1]."""
    N, K, L = output.shape
    NK = N * K

    x = output.reshape(NK, L)                          # streamed in native dtype
    t = target.reshape(NK, L)
    w = target_weight.reshape(NK, -1)[:, 0:1].astype(jnp.float32)

    cap = _vmem_capacity_bytes()
    itemsize = max(x.dtype.itemsize, t.dtype.itemsize)
    t_rows = _row_tile(NK, L, itemsize, cap // 12)     # two streamed inputs
    num_tiles = pl.cdiv(NK, t_rows)

    kernel = functools.partial(
        _kl_kernel, num_rows=NK, block_rows=t_rows,
        use_target_weight=bool(use_target_weight),
        denom=float(NK))                               # batchmean (/N) then /K

    cost = pl.CostEstimate(
        flops=int(12 * NK * L),
        transcendentals=int(3 * NK * L),
        bytes_accessed=int(x.size * x.dtype.itemsize + t.size * t.dtype.itemsize
                           + 4 * w.size + 4))

    out = pl.pallas_call(
        kernel,
        out_shape=jax.ShapeDtypeStruct((1, 1), jnp.float32),
        grid_spec=pltpu.PrefetchScalarGridSpec(
            num_scalar_prefetch=0,
            grid=(num_tiles,),
            in_specs=[
                pl.BlockSpec((t_rows, L), lambda j: (j, 0)),
                pl.BlockSpec((t_rows, L), lambda j: (j, 0)),
                pl.BlockSpec((t_rows, 1), lambda j: (j, 0)),
            ],
            out_specs=pl.BlockSpec((1, 1), lambda j: (0, 0)),
            scratch_shapes=[pltpu.VMEM((1, 1), jnp.float32)],
        ),
        compiler_params=pltpu.CompilerParams(
            dimension_semantics=("arbitrary",),
            vmem_limit_bytes=_vmem_limit_bytes(cap)),
        cost_estimate=cost,
    )(x, t, w)
    return out[0, 0]


# ----------------------------------------------------------------------------
# MultiLoss
# ----------------------------------------------------------------------------
def multi_loss(output, output_coord, coord, target, target_weight,
               use_target_weight=True):
    kld = kl_discret_loss(output, target, target_weight, use_target_weight)
    l1 = smooth_l1_loss(output_coord, coord, target_weight, use_target_weight)
    balance = 100000.0
    kld_scaled = kld * balance
    loss = kld_scaled + l1
    return loss, kld_scaled, l1


# ----------------------------------------------------------------------------
# pure-JAX references (for self-check)
# ----------------------------------------------------------------------------
def _ref_kl(output, target, target_weight, use_target_weight=True):
    N, K, _ = output.shape
    logp = jax.nn.log_softmax(output, axis=2)
    q = jax.nn.softmax(target, axis=2)
    if use_target_weight:
        logp = logp * target_weight
        q = q * target_weight
    pw = jnp.where(q > 0, q * (jnp.log(jnp.where(q > 0, q, 1.0)) - logp), 0.0)
    return jnp.sum(pw) / (N * K)


def _ref_smooth_l1(heatmaps, target, target_weight, use_target_weight=True,
                   beta=1.0):
    N, K, H, W = heatmaps.shape
    hm = heatmaps.reshape(N, K, H * W)
    idx = jnp.argmax(hm, axis=-1)
    maxvals = jnp.max(hm, axis=-1)
    preds = jnp.stack([(idx % W).astype(jnp.float32),
                       (idx // W).astype(jnp.float32)], axis=-1)
    preds = preds * (maxvals > 0)[..., None].astype(jnp.float32)
    if use_target_weight:
        preds = preds * target_weight
        target = target * target_weight
    d = preds - target
    ad = jnp.abs(d)
    elem = jnp.where(ad < beta, 0.5 * d * d / beta, ad - 0.5 * beta)
    return jnp.mean(elem)


def _ref_multi(output, output_coord, coord, target, target_weight,
               use_target_weight=True):
    kld = _ref_kl(output, target, target_weight, use_target_weight)
    l1 = _ref_smooth_l1(output_coord, coord, target_weight, use_target_weight)
    balance = 100000.0
    return kld * balance + l1, kld * balance, l1


if __name__ == "__main__":
    key = jax.random.PRNGKey(0)
    k1, k2, k3, k4, k5 = jax.random.split(key, 5)

    # small synthetic shapes: N=2 batch, K=4 joints, 16x16 heatmaps, 32 bins
    N, K, H, W, L = 2, 4, 16, 16, 32
    output = jax.random.normal(k1, (N, K, L), dtype=jnp.float32)        # SimCC logits
    target = jax.random.normal(k2, (N, K, L), dtype=jnp.float32)        # SimCC targets
    output_coord = jax.random.normal(k3, (N, K, H, W), dtype=jnp.float32)  # heatmaps
    coord = jax.random.uniform(k4, (N, K, 2), dtype=jnp.float32,
                               minval=0.0, maxval=float(W))
    target_weight = (jax.random.uniform(k5, (N, K, 1)) > 0.2).astype(jnp.float32)

    loss, kld, l1 = multi_loss(output, output_coord, coord, target,
                               target_weight, use_target_weight=True)
    loss = jax.block_until_ready(loss)
    kld = jax.block_until_ready(kld)
    l1 = jax.block_until_ready(l1)

    ref_loss, ref_kld, ref_l1 = _ref_multi(output, output_coord, coord, target,
                                           target_weight, use_target_weight=True)

    assert jnp.isfinite(loss) and jnp.isfinite(kld) and jnp.isfinite(l1), \
        "non-finite loss"
    assert jnp.allclose(l1, ref_l1, rtol=1e-4, atol=1e-5), (l1, ref_l1)
    assert jnp.allclose(kld, ref_kld, rtol=1e-4, atol=1e-3), (kld, ref_kld)
    assert jnp.allclose(loss, ref_loss, rtol=1e-4, atol=1e-3), (loss, ref_loss)
    print("KERNEL_OK")
</pallas_src>

<mosaic_0001>
module attributes {stable_mosaic.version = 11 : i64} {
  func.func @_kl_kernel(%arg0: i32, %arg1: memref<8x32xf32, #tpu.memory_space<vmem>>, %arg2: memref<8x32xf32, #tpu.memory_space<vmem>>, %arg3: memref<8x1xf32, #tpu.memory_space<vmem>>, %arg4: memref<1x1xf32, #tpu.memory_space<vmem>>, %arg5: memref<1x1xf32, #tpu.memory_space<vmem>>) attributes {dimension_semantics = [#tpu.dimension_semantics<arbitrary>], iteration_bounds = array<i64: 1>, scalar_prefetch = 0 : i64, scratch_operands = 1 : i64, tpu.core_type = #tpu.core_type<tc>, window_params = [{transform_indices = @transform_0, window_bounds = array<i64: 8, 32>}, {transform_indices = @transform_1, window_bounds = array<i64: 8, 32>}, {transform_indices = @transform_2, window_bounds = array<i64: 8, 1>}, {pipeline_mode = #tpu.pipeline_mode<synchronous>, transform_indices = @transform_3, window_bounds = array<i64: 1, 1>}]} {
    %c0_i32 = arith.constant 0 : i32
    %0 = arith.cmpi eq, %arg0, %c0_i32 : i32
    %1 = arith.extui %0 : i1 to i32
    %c0_i32_0 = arith.constant 0 : i32
    %2 = arith.cmpi ne, %1, %c0_i32_0 : i32
    scf.if %2 {
      %cst_23 = arith.constant 0.000000e+00 : f32
      %61 = vector.broadcast %cst_23 : f32 to vector<1x1xf32>
      %c0_24 = arith.constant 0 : index
      %c0_25 = arith.constant 0 : index
      %62 = vector.load %arg5[%c0_24, %c0_25] : memref<1x1xf32, #tpu.memory_space<vmem>>, vector<1x1xf32>
      tpu.vector_store %arg5[%c0_24, %c0_25], %61 {strides = array<i32>} : memref<1x1xf32, #tpu.memory_space<vmem>>, vector<1x1xf32>,
    } else {
    }
    %c0 = arith.constant 0 : index
    %c0_1 = arith.constant 0 : index
    %3 = vector.load %arg1[%c0, %c0_1] : memref<8x32xf32, #tpu.memory_space<vmem>>, vector<8x32xf32>
    %c0_2 = arith.constant 0 : index
    %c0_3 = arith.constant 0 : index
    %4 = vector.load %arg2[%c0_2, %c0_3] : memref<8x32xf32, #tpu.memory_space<vmem>>, vector<8x32xf32>
    %cst = arith.constant dense<0xFF800000> : vector<8xf32>
    %5 = vector.multi_reduction <maximumf>, %3, %cst [1] : vector<8x32xf32> to vector<8xf32>
    %6 = vector.shape_cast %5 : vector<8xf32> to vector<8x1xf32>
    %7 = vector.broadcast %6 : vector<8x1xf32> to vector<8x32xf32>
    %8 = arith.subf %3, %7 : vector<8x32xf32>
    %9 = math.exp %8 : vector<8x32xf32>
    %cst_4 = arith.constant dense<0.000000e+00> : vector<8xf32>
    %10 = vector.multi_reduction <add>, %9, %cst_4 [1] : vector<8x32xf32> to vector<8xf32>
    %11 = vector.shape_cast %10 : vector<8xf32> to vector<8x1xf32>
    %12 = math.log %11 : vector<8x1xf32>
    %13 = vector.broadcast %12 : vector<8x1xf32> to vector<8x32xf32>
    %14 = arith.subf %8, %13 : vector<8x32xf32>
    %cst_5 = arith.constant dense<0xFF800000> : vector<8xf32>
    %15 = vector.multi_reduction <maximumf>, %4, %cst_5 [1] : vector<8x32xf32> to vector<8xf32>
    %16 = vector.shape_cast %15 : vector<8xf32> to vector<8x1xf32>
    %17 = vector.broadcast %16 : vector<8x1xf32> to vector<8x32xf32>
    %18 = arith.subf %4, %17 : vector<8x32xf32>
    %19 = math.exp %18 : vector<8x32xf32>
    %cst_6 = arith.constant dense<0.000000e+00> : vector<8xf32>
    %20 = vector.multi_reduction <add>, %19, %cst_6 [1] : vector<8x32xf32> to vector<8xf32>
    %21 = vector.shape_cast %20 : vector<8xf32> to vector<8x1xf32>
    %22 = vector.broadcast %21 : vector<8x1xf32> to vector<8x32xf32>
    %23 = arith.divf %19, %22 : vector<8x32xf32>
    %c0_7 = arith.constant 0 : index
    %c0_8 = arith.constant 0 : index
    %24 = vector.load %arg3[%c0_7, %c0_8] : memref<8x1xf32, #tpu.memory_space<vmem>>, vector<8x1xf32>
    %25 = vector.broadcast %24 : vector<8x1xf32> to vector<8x32xf32>
    %26 = arith.mulf %14, %25 : vector<8x32xf32>
    %27 = vector.broadcast %24 : vector<8x1xf32> to vector<8x32xf32>
    %28 = arith.mulf %23, %27 : vector<8x32xf32>
    %cst_9 = arith.constant 0.000000e+00 : f32
    %29 = vector.broadcast %cst_9 : f32 to vector<8x32xf32>
    %30 = arith.cmpf ogt, %28, %29 : vector<8x32xf32>
    %cst_10 = arith.constant 1.000000e+00 : f32
    %31 = vector.broadcast %cst_10 : f32 to vector<8x32xf32>
    %32 = arith.select %30, %28, %31 : vector<8x32xi1>, vector<8x32xf32>
    %cst_11 = arith.constant 0.000000e+00 : f32
    %33 = vector.broadcast %cst_11 : f32 to vector<8x32xf32>
    %34 = arith.cmpf ogt, %28, %33 : vector<8x32xf32>
    %35 = math.log %32 : vector<8x32xf32>
    %36 = arith.subf %35, %26 : vector<8x32xf32>
    %37 = arith.mulf %28, %36 : vector<8x32xf32>
    %cst_12 = arith.constant 0.000000e+00 : f32
    %38 = vector.broadcast %cst_12 : f32 to vector<8x32xf32>
    %39 = arith.select %34, %37, %38 : vector<8x32xi1>, vector<8x32xf32>
    %cst_13 = arith.constant dense<0.000000e+00> : vector<8xf32>
    %40 = vector.multi_reduction <add>, %39, %cst_13 [1] : vector<8x32xf32> to vector<8xf32>
    %41 = vector.shape_cast %40 : vector<8xf32> to vector<8x1xf32>
    %c8_i32 = arith.constant 8 : i32
    %42 = arith.muli %arg0, %c8_i32 : i32
    %43 = tpu.iota {dimensions = array<i32: 0>} : vector<8x1xi32>
    %44 = vector.broadcast %42 : i32 to vector<8x1xi32>
    %45 = arith.addi %44, %43 : vector<8x1xi32>
    %c8_i32_14 = arith.constant 8 : i32
    %46 = vector.broadcast %c8_i32_14 : i32 to vector<8x1xi32>
    %47 = arith.cmpi slt, %45, %46 : vector<8x1xi32>
    %cst_15 = arith.constant 0.000000e+00 : f32
    %48 = vector.broadcast %cst_15 : f32 to vector<8x1xf32>
    %49 = arith.select %47, %41, %48 : vector<8x1xi1>, vector<8x1xf32>
    %c0_16 = arith.constant 0 : index
    %c0_17 = arith.constant 0 : index
    %50 = vector.load %arg5[%c0_16, %c0_17] : memref<1x1xf32, #tpu.memory_space<vmem>>, vector<1x1xf32>
    %51 = vector.shape_cast %49 : vector<8x1xf32> to vector<1x8x1xf32>
    %cst_18 = arith.constant dense<0.000000e+00> : vector<1xf32>
    %52 = vector.multi_reduction <add>, %51, %cst_18 [1, 2] : vector<1x8x1xf32> to vector<1xf32>
    %53 = vector.shape_cast %52 : vector<1xf32> to vector<1x1x1xf32>
    %54 = vector.extract %53[0, 0, 0] : f32 from vector<1x1x1xf32>
    %55 = vector.broadcast %54 : f32 to vector<1x1xf32>
    %56 = arith.addf %50, %55 : vector<1x1xf32>
    %c0_19 = arith.constant 0 : index
    %c0_20 = arith.constant 0 : index
    %57 = vector.load %arg5[%c0_19, %c0_20] : memref<1x1xf32, #tpu.memory_space<vmem>>, vector<1x1xf32>
    tpu.vector_store %arg5[%c0_19, %c0_20], %56 {strides = array<i32>} : memref<1x1xf32, #tpu.memory_space<vmem>>, vector<1x1xf32>,
    %c0_i32_21 = arith.constant 0 : i32
    %58 = arith.cmpi eq, %arg0, %c0_i32_21 : i32
    %59 = arith.extui %58 : i1 to i32
    %c0_i32_22 = arith.constant 0 : i32
    %60 = arith.cmpi ne, %59, %c0_i32_22 : i32
    scf.if %60 {
      %c0_23 = arith.constant 0 : index
      %c0_24 = arith.constant 0 : index
      %61 = vector.load %arg5[%c0_23, %c0_24] : memref<1x1xf32, #tpu.memory_space<vmem>>, vector<1x1xf32>
      %cst_25 = arith.constant 1.250000e-01 : f32
      %62 = vector.broadcast %cst_25 : f32 to vector<1x1xf32>
      %63 = arith.mulf %61, %62 : vector<1x1xf32>
      %c0_26 = arith.constant 0 : index
      %c0_27 = arith.constant 0 : index
      %64 = vector.load %arg4[%c0_26, %c0_27] : memref<1x1xf32, #tpu.memory_space<vmem>>, vector<1x1xf32>
      tpu.vector_store %arg4[%c0_26, %c0_27], %63 {strides = array<i32>} : memref<1x1xf32, #tpu.memory_space<vmem>>, vector<1x1xf32>,
    } else {
    }
    return
  }
  func.func @transform_0(%arg0: i32) -> (i32, i32) {
    %c0_i32 = arith.constant 0 : i32
    %c0_i32_0 = arith.constant 0 : i32
    return %arg0, %c0_i32 : i32, i32
  }
  func.func @transform_1(%arg0: i32) -> (i32, i32) {
    %c0_i32 = arith.constant 0 : i32
    %c0_i32_0 = arith.constant 0 : i32
    return %arg0, %c0_i32 : i32, i32
  }
  func.func @transform_2(%arg0: i32) -> (i32, i32) {
    %c0_i32 = arith.constant 0 : i32
    %c0_i32_0 = arith.constant 0 : i32
    return %arg0, %c0_i32 : i32, i32
  }
  func.func @transform_3(%arg0: i32) -> (i32, i32) {
    %c0_i32 = arith.constant 0 : i32
    %c0_i32_0 = arith.constant 0 : i32
    %c0_i32_1 = arith.constant 0 : i32
    return %c0_i32, %c0_i32_0 : i32, i32
  }
}

</mosaic_0001>

<bundles_post_ra>
// kernel: tpu_custom_call.1
= control target key start
LH: loop header
LB: loop body
LE: loop exit
PB: predicated region body
PF: predicated region fallthrough
CT: control target
= control target key end

     0   :  { %8 = vsyncpa [#allocation4], 0  ;;  %s226_s0 = inlined_call_operand.vmem [shape: f32[8,32], index: 0, kind: input, shape index: {}]   ;;  %s227_s1 = inlined_call_operand.hbm [shape: f32[8,32], index: 1, kind: input, shape index: {}]   ;;  %s228_s2 = inlined_call_operand.vmem [shape: f32[8,1], index: 2, kind: input, shape index: {}]   ;;  %s229_s3 = inlined_call_operand.hbm [shape: f32[1,1], index: 3, kind: output, shape index: {}]  }
   0x1   :  { %9 = vsyncpa [#allocation5], 0  ;;  %s182_s12 = smov [#allocation3]  }
   0x2   :  { %s18_s13 = sshll.u32 %s182_s12, 4  ;;  %s19_s13 = int_to_ptr.vmem [resolvable:$true] %s18_s13 }
   0x3   :  { %s146_s14 = scalar_lea.vmem %s19_s13, 128  ;;  %p151_p1 = scmp.lt.s32.totalorder %s19_s13, %s19_s13 }
   0x4   :  { %p147_p0 = scmp.ne.s32.totalorder %s19_s13, %s146_s14  ;;  %p152_p2 = scmp.lt.s32.totalorder %s146_s14, %s146_s14 }
   0x6   :  { %p153_p3 = por %p152_p2, %p151_p1 }
   0x8   :  { %p154_p4 = pnand %p153_p3, %p147_p0 }
   0xa   :  { %157 = shalt.err (!%p154_p4)
}
   0xb   :  { %21 = dma.hbm_to_vmem [thread:$0]  %s227_s1, 128, %s19_s13, [#allocation4]  }
   0xc   :  { %178 = dma.done.wait [#allocation4], 128  }
   0xd   :  { %179 = vsyncadd [#allocation4], 4294967168  ;;  %vm35_vm0 = vcmask 261120   ;;  %v34_v0 = vld [vmem:[#allocation3] sm:$0xff]  ;;  %v183_v5 = vmov 0   ;;  %vm85_vm2 = vcmask 7168  }
   0xe   :  { %v33_v1 = vld [vmem:[%s226_s0] sm:$0xff]  ;;  %v48_v2 = vsel %vm35_vm0, %v34_v0, -inf  ;;  %127 = vset.pattern.permute.xlu0 %v183_v5  ;;  %vm31_vm3 = vcmask 0   ;;  %v184_v35 = vmov 0.0   ;;  %s185_s1 = smov [#allocation6]  }
   0xf   :  { %49 = vmax.xlane.f32.xlu0 %v48_v2  ;;  %v36_v3 = vsel %vm35_vm0, %v33_v1, -inf  ;;  %v59_v4 = vld [vmem:[%s228_s2] sm:$0xff]  ;;  %32 = vst.msk [vmem:[#allocation2] sm:$0x1] %vm31_vm3, %v184_v35  ;;  %s112_s2 = sshll.u32 %s185_s1, 4  ;;  %s113_s2 = int_to_ptr.vmem [resolvable:$true] %s112_s2 }
  0x10   :  { %s158_s21 = scalar_lea.vmem %s113_s2, 16  ;;  %s162_s22 = scalar_lea.vmem %s113_s2, 32 }
  0x11   :  { %p159_p5 = scmp.ne.s32.totalorder %s113_s2, %s158_s21  ;;  %p163_p6 = scmp.lt.s32.totalorder %s113_s2, %s113_s2 }
  0x12   :  { %p164_p7 = scmp.lt.s32.totalorder %s162_s22, %s158_s21 }
  0x13   :  { %37 = vmax.xlane.f32.xlu0 %v36_v3 }
  0x14   :  { %p165_p8 = por %p164_p7, %p163_p6 }
  0x16   :  { %v84_v43 = vld [vmem:[#allocation2] sm:$0x1]  ;;  %p166_p9 = pnand %p165_p8, %p159_p5 }
  0x29   :  { %62 = vperm.xlu0 %127, %v59_v4  }
  0x98   :  { %v50_v6 = vpop.xlane.xlu0 %49 }
  0x99   :  { %v51_v7 = vsub.f32 %v34_v0, %v50_v6 }
  0x9b   :  { %v52_v8 = vmul.f32 1.442695, %v51_v7 }
  0x9c   :  { %v38_v9 = vpop.xlane.xlu0 %37 }
  0x9d   :  { %128 = vpow2.f32 %v52_v8  ;;  %v39_v10 = vsub.f32 %v33_v1, %v38_v9 }
  0x9f   :  { %v40_v11 = vmul.f32 1.442695, %v39_v10 }
  0xa1   :  { %130 = vpow2.f32 %v40_v11 }
  0xa4   :  { %v63_v19 = vpop.permute.xlu0 %62 }
  0xaa   :  { %v129_v12 = vpop.eup %128 }
  0xab   :  { %v54_v13 = vsel %vm35_vm0, %v129_v12, 0.0 }
  0xac   :  { %55 = vadd.xlane.f32.xlu1 %v54_v13 }
  0xae   :  { %v131_v14 = vpop.eup %130 }
  0xaf   :  { %v42_v15 = vsel %vm35_vm0, %v131_v14, 0.0 }
  0xb0   :  { %43 = vadd.xlane.f32.xlu1 %v42_v15 }
 0x135   :  { %v56_v16 = vpop.xlane.xlu1 %55 }
 0x136   :  { %132 = vrcp.f32 %v56_v16 }
 0x139   :  { %v44_v17 = vpop.xlane.xlu1 %43 }
 0x13a   :  { %134 = vlog2.f32 %v44_v17 }
 0x143   :  { %v133_v18 = vpop.eup %132 }
 0x144   :  { %v58_v20 = vmul.f32 %v133_v18, %v129_v12 }
 0x146   :  { %v66_v21 = vmul.f32 %v63_v19, %v58_v20 }
 0x147   :  { %v135_v23 = vpop.eup %134 }
 0x148   :  { %vm67_vm1 = vcmp.gt.f32.partialorder %v66_v21, 0.0  ;;  %v46_v24 = vmul.f32 0.6931472, %v135_v23 }
 0x149   :  { %v68_v22 = vsel %vm67_vm1, %v66_v21, 1.0 }
 0x14a   :  { %136 = vlog2.f32 %v68_v22  ;;  %v47_v25 = vsub.f32 %v39_v10, %v46_v24 }
 0x14c   :  { %v65_v27 = vmul.f32 %v63_v19, %v47_v25 }
 0x157   :  { %v137_v26 = vpop.eup %136 }
 0x158   :  { %v70_v28 = vmul.f32 0.6931472, %v137_v26 }
 0x15a   :  { %v71_v29 = vsub.f32 %v70_v28, %v65_v27 }
 0x15c   :  { %v72_v30 = vmul.f32 %v71_v29, %v66_v21 }
 0x15e   :  { %v73_v31 = vsel %vm67_vm1, %v72_v30, 0.0 }
 0x15f   :  { %v74_v32 = vsel %vm35_vm0, %v73_v31, 0.0 }
 0x160   :  { %75 = vadd.xlane.f32.xlu1 %v74_v32 }
 0x1e9   :  { %v76_v33 = vpop.xlane.xlu1 %75 }
 0x1ea   :  { %v86_v34 = vsel %vm85_vm2, %v76_v33, 0.0 }
 0x1eb   :  { %87 = vadd.xlane.f32.xlu1 %v86_v34 }
 0x274   :  { %v88_v36 = vpop.xlane.xlu1 %87 }
 0x275   :  { %v89_v37 = vrot.slane %v88_v36, 4 }
 0x277   :  { %v90_v38 = vadd.f32 %v89_v37, %v88_v36 }
 0x279   :  { %v91_v39 = vrot.slane %v90_v38, 2 }
 0x27b   :  { %v92_v40 = vadd.f32 %v91_v39, %v90_v38 }
 0x27d   :  { %v93_v41 = vrot.slane %v92_v40, 1 }
 0x27f   :  { %v94_v42 = vadd.f32 %v93_v41, %v92_v40 }
 0x281   :  { %121 = vpush %v94_v42 }
 0x2b2   :  { %s122_s0 = spop %121 }
 0x2b3   :  { %v96_v44 = vstv %s122_s0 }
 0x2b4   :  { %v97_v45 = vadd.f32 %v96_v44, %v84_v43 }
 0x2b6   :  { %99 = vst.msk [vmem:[#allocation2] sm:$0x1] %vm31_vm3, %v97_v45 }
 0x2bd   :  { %v103_v46 = vld [vmem:[#allocation2] sm:$0x1] }
 0x2be   :  { %v104_v47 = vmul.f32 0.125, %v103_v46 }
 0x2c0   :  { %105 = vst.msk [vmem:[#allocation6] sm:$0x1] %vm31_vm3, %v104_v47 }
 0x2c1   :  { %169 = shalt.err (!%p166_p9)
}
 0x2c2   :  { %115 = dma.vmem_to_hbm [thread:$0]  %s113_s2, 16, %s229_s3, [#allocation5]  }
 0x2c3   :  { %180 = dma.done.wait [#allocation5], 16  }
 0x2c4   :  { %181 = vsyncadd [#allocation5], 4294967280 }
 0x2c5   :  { %119 = vsyncpa [#allocation4], 1 }
 0x2c6   :  { %120 = vsyncpa [#allocation5], 1 }

</bundles_post_ra>
